<compile_context>
chip_gen: v5e
topology: v5e:2x2
jax: 0.10.0
libtpu: 0.0.40
codegen_flags: <defaults>
</compile_context>

<pallas_src>
import functools

import jax
import jax.numpy as jnp
from jax.experimental import pallas as pl
from jax.experimental.pallas import tpu as pltpu


# ----------------------------------------------------------------------------
# Shared per-step math (traced inside the kernels)
# ----------------------------------------------------------------------------
def _step_math(x, h, d, cell_list, wx, wh, wd, b, wy, by, *, k, H):
    """One MLSTM cell update. All activations f32; matmul operands in wx.dtype."""
    f32 = jnp.float32
    cd = wx.dtype  # matmul operand dtype (f32 or bf16; accumulation stays f32)

    # Fused gate pre-activations: one (B,4H) result instead of 4 (B,H) matmuls.
    z = (jnp.dot(x.astype(cd), wx, preferred_element_type=f32)
         + jnp.dot(h.astype(cd), wh, preferred_element_type=f32)
         + b.astype(f32))
    zm = z[:, 2 * H:3 * H] + jnp.dot(d.astype(cd), wd, preferred_element_type=f32)

    i_gate = jax.nn.sigmoid(z[:, 0:H])
    o_gate = jax.nn.sigmoid(z[:, H:2 * H])
    mem = 0.5 * jax.nn.sigmoid(zm)                  # new mem_para, (B, H)
    c_tilde = jnp.tanh(z[:, 3 * H:4 * H])

    # Fractional-differencing memory filter (mem_filter / get_weight_1d):
    #   w[k-1-i] = prod_{j=0..i} (j - d) / (j + 1);  cell_filtered = -sum w*c
    coef = jnp.ones_like(mem)
    acc = jnp.zeros_like(mem)
    for i in range(k):  # k is a small static constant -> unrolled
        coef = coef * ((jnp.float32(i) - mem) * (1.0 / (i + 1)))  # const mul, no div
        acc = acc + coef * cell_list[k - 1 - i]
    cell_new = -acc + c_tilde * i_gate

    h_new = o_gate * jnp.tanh(cell_new)
    out = jnp.dot(h_new.astype(cd), wy, preferred_element_type=f32) + by.astype(f32)
    return out, h_new, cell_new, mem


# ----------------------------------------------------------------------------
# Single-step kernel (matches MLSTMCell.forward exactly)
# ----------------------------------------------------------------------------
def mlstm_cell_kernel(
    x_ref, h_ref, cells_ref, d_ref,
    wx_ref, wh_ref, wd_ref, b_ref, wy_ref, by_ref,
    slab_ref, cells_out_ref,
    *, k: int, H: int,
):
    f32 = jnp.float32
    cell_list = [cells_ref[i].astype(f32) for i in range(k)]

    out, h_new, cell_new, mem = _step_math(
        x_ref[...].astype(f32), h_ref[...].astype(f32), d_ref[...].astype(f32),
        cell_list,
        wx_ref[...], wh_ref[...], wd_ref[...], b_ref[...], wy_ref[...], by_ref[...],
        k=k, H=H)

    # Packed output slab: [out | h_new | mem_new]  -> one dense store.
    slab_ref[...] = jnp.concatenate([out, h_new, mem], axis=1).astype(slab_ref.dtype)

    # Rotate the cell stack in-kernel (drop oldest, append newest).
    for i in range(k - 1):
        cells_out_ref[i] = cell_list[i + 1].astype(cells_out_ref.dtype)
    cells_out_ref[k - 1] = cell_new.astype(cells_out_ref.dtype)


def mlstm_cell(sample, hiddens_all, fused, *, k):
    """One cell step. Returns (output, (hidden, updated_cell_states, mem_para))."""
    B, _ = sample.shape
    H = fused["wh"].shape[0]
    O = fused["wy"].shape[1]
    dt = sample.dtype

    if hiddens_all is None:
        hidden = jnp.zeros((B, H), dt)
        cells = jnp.zeros((k, B, H), dt)
        mem_para = jnp.zeros((B, H), dt)
    else:
        hidden, cells, mem_para = hiddens_all

    vmem = pl.BlockSpec(memory_space=pltpu.MemorySpace.VMEM)
    slab, cells_new = pl.pallas_call(
        functools.partial(mlstm_cell_kernel, k=k, H=H),
        in_specs=[vmem] * 10,
        out_specs=(vmem, vmem),
        out_shape=(
            jax.ShapeDtypeStruct((B, O + 2 * H), dt),   # [out | h_new | mem_new]
            jax.ShapeDtypeStruct((k, B, H), dt),        # rotated cell stack
        ),
    )(
        sample, hidden, cells, mem_para,
        fused["wx"], fused["wh"], fused["wd"], fused["b"], fused["wy"], fused["by"],
    )

    out = slab[:, :O]
    h_new = slab[:, O:O + H]
    mem_new = slab[:, O + H:]
    return out, (h_new, cells_new, mem_new)


# ----------------------------------------------------------------------------
# Fused multi-step kernel: whole recurrence inside one pallas_call
# (grid over time, weights resident in VMEM, state carried in VMEM scratch)
# ----------------------------------------------------------------------------
def mlstm_seq_kernel(
    x_ref, h0_ref, cells0_ref, d0_ref,
    wx_ref, wh_ref, wd_ref, b_ref, wy_ref, by_ref,
    out_ref, state_ref, cells_out_ref,
    h_s, cells_s, d_s,
    *, k: int, H: int,
):
    f32 = jnp.float32
    t = pl.program_id(0)

    @pl.when(t == 0)
    def _init():
        h_s[...] = h0_ref[...].astype(f32)
        cells_s[...] = cells0_ref[...].astype(f32)
        d_s[...] = d0_ref[...].astype(f32)

    cell_list = [cells_s[i] for i in range(k)]
    out, h_new, cell_new, mem = _step_math(
        x_ref[...].astype(f32), h_s[...], d_s[...], cell_list,
        wx_ref[...], wh_ref[...], wd_ref[...], b_ref[...], wy_ref[...], by_ref[...],
        k=k, H=H)

    # Carry state in VMEM scratch (no HBM round-trip between steps).
    h_s[...] = h_new
    d_s[...] = mem
    for i in range(k - 1):
        cells_s[i] = cell_list[i + 1]
    cells_s[k - 1] = cell_new

    out_ref[...] = out.astype(out_ref.dtype)

    @pl.when(t == pl.num_programs(0) - 1)
    def _finalize():
        state_ref[...] = jnp.concatenate([h_new, mem], axis=1).astype(state_ref.dtype)
        cells_out_ref[...] = cells_s[...].astype(cells_out_ref.dtype)


def mlstm_sequence(xs, init_state, fused, *, k):
    """Run the cell over xs[(T,B,I)] in a single kernel.

    Returns (outputs[(T,B,O)], (hidden, cell_stack, mem_para)) — identical to
    iterating mlstm_cell over the T steps.
    """
    T, B, I = xs.shape
    H = fused["wh"].shape[0]
    O = fused["wy"].shape[1]
    dt = xs.dtype

    if init_state is None:
        h0 = jnp.zeros((B, H), dt)
        cells0 = jnp.zeros((k, B, H), dt)
        d0 = jnp.zeros((B, H), dt)
    else:
        h0, cells0, d0 = init_state

    const2 = lambda t: (0, 0)
    const3 = lambda t: (0, 0, 0)

    grid_spec = pltpu.PrefetchScalarGridSpec(
        num_scalar_prefetch=0,
        grid=(T,),
        in_specs=[
            pl.BlockSpec((None, B, I), lambda t: (t, 0, 0)),   # x_t streamed in
            pl.BlockSpec((B, H), const2),                      # h0   (resident)
            pl.BlockSpec((k, B, H), const3),                   # cells0 (resident)
            pl.BlockSpec((B, H), const2),                      # d0   (resident)
            pl.BlockSpec((I, 4 * H), const2),                  # Wx   (resident)
            pl.BlockSpec((H, 4 * H), const2),                  # Wh   (resident)
            pl.BlockSpec((H, H), const2),                      # Wd   (resident)
            pl.BlockSpec((1, 4 * H), const2),                  # b    (resident)
            pl.BlockSpec((H, O), const2),                      # Wy   (resident)
            pl.BlockSpec((1, O), const2),                      # by   (resident)
        ],
        out_specs=[
            pl.BlockSpec((None, B, O), lambda t: (t, 0, 0)),   # out_t streamed out
            pl.BlockSpec((B, 2 * H), const2),                  # [h_f | mem_f]
            pl.BlockSpec((k, B, H), const3),                   # final cell stack
        ],
        scratch_shapes=[
            pltpu.VMEM((B, H), jnp.float32),                   # h carry
            pltpu.VMEM((k, B, H), jnp.float32),                # cell-stack carry
            pltpu.VMEM((B, H), jnp.float32),                   # mem_para carry
        ],
    )

    outs, state, cells_f = pl.pallas_call(
        functools.partial(mlstm_seq_kernel, k=k, H=H),
        grid_spec=grid_spec,
        out_shape=(
            jax.ShapeDtypeStruct((T, B, O), dt),
            jax.ShapeDtypeStruct((B, 2 * H), dt),
            jax.ShapeDtypeStruct((k, B, H), dt),
        ),
        compiler_params=pltpu.CompilerParams(
            dimension_semantics=("arbitrary",)),   # time recurrence is sequential
    )(
        xs, h0, cells0, d0,
        fused["wx"], fused["wh"], fused["wd"], fused["b"], fused["wy"], fused["by"],
    )

    h_f = state[:, :H]
    d_f = state[:, H:]
    return outs, (h_f, cells_f, d_f)


# ----------------------------------------------------------------------------
# Parameters: PyTorch-layout construction + one-time fusion for the kernels
# ----------------------------------------------------------------------------
def make_params(key, input_size, hidden_size, output_size):
    """Orthogonal weights, zero biases; stored as (in, out) so y = x @ W + b."""
    ortho = jax.nn.initializers.orthogonal()
    ks = jax.random.split(key, 5)
    f32 = jnp.float32

    def linear(kk, in_f, out_f):
        w = ortho(kk, (out_f, in_f), f32).T
        b = jnp.zeros((1, out_f), f32)
        return w, b

    wi, bi = linear(ks[0], input_size + hidden_size, hidden_size)
    wo, bo = linear(ks[1], input_size + hidden_size, hidden_size)
    wm, bm = linear(ks[2], input_size + 2 * hidden_size, hidden_size)
    wc, bc = linear(ks[3], input_size + hidden_size, hidden_size)
    wy, by = linear(ks[4], hidden_size, output_size)
    return dict(wi=wi, bi=bi, wo=wo, bo=bo, wm=wm, bm=bm,
                wc=wc, bc=bc, wy=wy, by=by)


def fuse_params(params, input_size, hidden_size, *, mxu_dtype=None):
    """Fuse the 4 gate Linears into (I,4H)/(H,4H)/(H,H) + (1,4H) bias.

    mxu_dtype=jnp.bfloat16 pre-casts the matmul weight matrices (v6e/v7x);
    biases and all elementwise math stay f32.
    """
    I, H = input_size, hidden_size
    cast = (lambda w: w) if mxu_dtype is None else (lambda w: w.astype(mxu_dtype))
    wx = jnp.concatenate(
        [params["wi"][:I], params["wo"][:I], params["wm"][:I], params["wc"][:I]], axis=1)
    wh = jnp.concatenate(
        [params["wi"][I:], params["wo"][I:], params["wm"][I:I + H], params["wc"][I:]],
        axis=1)
    wd = params["wm"][I + H:]
    b = jnp.concatenate([params["bi"], params["bo"], params["bm"], params["bc"]], axis=1)
    return dict(wx=cast(wx), wh=cast(wh), wd=cast(wd), b=b.astype(jnp.float32),
                wy=cast(params["wy"]), by=params["by"].astype(jnp.float32))


# ----------------------------------------------------------------------------
# Pure-JAX reference (mirrors the PyTorch forward) for correctness checks
# ----------------------------------------------------------------------------
def ref_forward(sample, hidden, cells, mem_para, p, k):
    xh = jnp.concatenate([sample, hidden], axis=1)
    xhd = jnp.concatenate([sample, hidden, mem_para], axis=1)
    i_g = jax.nn.sigmoid(xh @ p["wi"] + p["bi"])
    o_g = jax.nn.sigmoid(xh @ p["wo"] + p["bo"])
    mem = 0.5 * jax.nn.sigmoid(xhd @ p["wm"] + p["bm"])
    c_t = jnp.tanh(xh @ p["wc"] + p["bc"])
    coef = jnp.ones_like(mem)
    acc = jnp.zeros_like(mem)
    for i in range(k):
        coef = coef * (i - mem) / (i + 1)
        acc = acc + coef * cells[k - 1 - i]
    c_new = -acc + c_t * i_g
    h_new = o_g * jnp.tanh(c_new)
    out = h_new @ p["wy"] + p["by"]
    updated_cells = jnp.concatenate([cells[1:], c_new[None]], axis=0)
    return out, h_new, updated_cells, mem


# ----------------------------------------------------------------------------
if __name__ == "__main__":
    B, I, H, O, K, T = 8, 16, 32, 8, 4, 6   # B=8 fills the sublane dim; 4H=128 lanes

    key = jax.random.PRNGKey(0)
    k_param, k_x, k_h, k_c, k_d, k_seq = jax.random.split(key, 6)

    params = make_params(k_param, I, H, O)
    fused = fuse_params(params, I, H)                       # f32 weights

    sample = jax.random.normal(k_x, (B, I), jnp.float32)
    hidden = jax.random.normal(k_h, (B, H), jnp.float32) * 0.1
    cells = jax.random.normal(k_c, (K, B, H), jnp.float32) * 0.1
    mem_para = jax.nn.sigmoid(jax.random.normal(k_d, (B, H), jnp.float32)) * 0.5

    # ---- single-step kernel (module semantics) ------------------------------
    out, (h_new, cells_new, mem_new) = mlstm_cell(
        sample, (hidden, cells, mem_para), fused, k=K)
    out0, (h0_, cells0_, mem0_) = mlstm_cell(sample, None, fused, k=K)
    jax.block_until_ready((out, h_new, cells_new, mem_new, out0, h0_, cells0_, mem0_))

    r_out, r_h, r_cells, r_mem = ref_forward(sample, hidden, cells, mem_para, params, K)
    assert jnp.allclose(out, r_out, atol=1e-5), "output mismatch"
    assert jnp.allclose(h_new, r_h, atol=1e-5), "hidden mismatch"
    assert jnp.allclose(cells_new, r_cells, atol=1e-5), "cell-stack mismatch"
    assert jnp.allclose(mem_new, r_mem, atol=1e-5), "mem_para mismatch"

    zH = jnp.zeros((B, H), jnp.float32)
    z_out, z_h, _, _ = ref_forward(sample, zH, jnp.zeros((K, B, H), jnp.float32), zH,
                                   params, K)
    assert jnp.allclose(out0, z_out, atol=1e-5), "None-state output mismatch"
    assert jnp.allclose(h0_, z_h, atol=1e-5), "None-state hidden mismatch"

    # ---- fused sequence kernel (time loop inside the kernel) ----------------
    xs = jax.random.normal(k_seq, (T, B, I), jnp.float32)
    outs, (h_f, cells_f, d_f) = mlstm_sequence(xs, (hidden, cells, mem_para), fused, k=K)
    jax.block_until_ready((outs, h_f, cells_f, d_f))

    rh, rc, rd = hidden, cells, mem_para
    ref_outs = []
    for t in range(T):
        ro, rh, rc, rd = ref_forward(xs[t], rh, rc, rd, params, K)
        ref_outs.append(ro)
    ref_outs = jnp.stack(ref_outs, 0)
    assert jnp.allclose(outs, ref_outs, atol=1e-4), "sequence outputs mismatch"
    assert jnp.allclose(h_f, rh, atol=1e-4), "sequence hidden mismatch"
    assert jnp.allclose(cells_f, rc, atol=1e-4), "sequence cell-stack mismatch"
    assert jnp.allclose(d_f, rd, atol=1e-4), "sequence mem_para mismatch"

    # ---- bf16 MXU-operand variant (v6e/v7x), f32 accumulation/elementwise ----
    fused_bf16 = fuse_params(params, I, H, mxu_dtype=jnp.bfloat16)
    out_bf, (h_bf, _, _) = mlstm_cell(sample, (hidden, cells, mem_para), fused_bf16, k=K)
    jax.block_until_ready((out_bf, h_bf))
    assert jnp.allclose(out_bf, r_out, atol=5e-2), "bf16 output mismatch"
    assert jnp.allclose(h_bf, r_h, atol=5e-2), "bf16 hidden mismatch"

    print("KERNEL_OK")
</pallas_src>

<mosaic_0001>
module attributes {stable_mosaic.version = 11 : i64} {
  func.func @mlstm_cell_kernel(%arg0: memref<8x16xf32, #tpu.memory_space<vmem>>, %arg1: memref<8x32xf32, #tpu.memory_space<vmem>>, %arg2: memref<4x8x32xf32, #tpu.memory_space<vmem>>, %arg3: memref<8x32xf32, #tpu.memory_space<vmem>>, %arg4: memref<16x128xf32, #tpu.memory_space<vmem>>, %arg5: memref<32x128xf32, #tpu.memory_space<vmem>>, %arg6: memref<32x32xf32, #tpu.memory_space<vmem>>, %arg7: memref<1x128xf32, #tpu.memory_space<vmem>>, %arg8: memref<32x8xf32, #tpu.memory_space<vmem>>, %arg9: memref<1x8xf32, #tpu.memory_space<vmem>>, %arg10: memref<8x72xf32, #tpu.memory_space<vmem>>, %arg11: memref<4x8x32xf32, #tpu.memory_space<vmem>>) attributes {dimension_semantics = [], scalar_prefetch = 0 : i64, scratch_operands = 0 : i64, tpu.core_type = #tpu.core_type<tc>} {
    %c0 = arith.constant 0 : index
    %c0_0 = arith.constant 0 : index
    %c0_1 = arith.constant 0 : index
    %0 = vector.load %arg2[%c0, %c0_0, %c0_1] : memref<4x8x32xf32, #tpu.memory_space<vmem>>, vector<1x8x32xf32>
    %1 = vector.shape_cast %0 : vector<1x8x32xf32> to vector<8x32xf32>
    %c1 = arith.constant 1 : index
    %c0_2 = arith.constant 0 : index
    %c0_3 = arith.constant 0 : index
    %2 = vector.load %arg2[%c1, %c0_2, %c0_3] : memref<4x8x32xf32, #tpu.memory_space<vmem>>, vector<1x8x32xf32>
    %3 = vector.shape_cast %2 : vector<1x8x32xf32> to vector<8x32xf32>
    %c2 = arith.constant 2 : index
    %c0_4 = arith.constant 0 : index
    %c0_5 = arith.constant 0 : index
    %4 = vector.load %arg2[%c2, %c0_4, %c0_5] : memref<4x8x32xf32, #tpu.memory_space<vmem>>, vector<1x8x32xf32>
    %5 = vector.shape_cast %4 : vector<1x8x32xf32> to vector<8x32xf32>
    %c3 = arith.constant 3 : index
    %c0_6 = arith.constant 0 : index
    %c0_7 = arith.constant 0 : index
    %6 = vector.load %arg2[%c3, %c0_6, %c0_7] : memref<4x8x32xf32, #tpu.memory_space<vmem>>, vector<1x8x32xf32>
    %7 = vector.shape_cast %6 : vector<1x8x32xf32> to vector<8x32xf32>
    %c0_8 = arith.constant 0 : index
    %c0_9 = arith.constant 0 : index
    %8 = vector.load %arg0[%c0_8, %c0_9] : memref<8x16xf32, #tpu.memory_space<vmem>>, vector<8x16xf32>
    %c0_10 = arith.constant 0 : index
    %c0_11 = arith.constant 0 : index
    %9 = vector.load %arg1[%c0_10, %c0_11] : memref<8x32xf32, #tpu.memory_space<vmem>>, vector<8x32xf32>
    %c0_12 = arith.constant 0 : index
    %c0_13 = arith.constant 0 : index
    %10 = vector.load %arg3[%c0_12, %c0_13] : memref<8x32xf32, #tpu.memory_space<vmem>>, vector<8x32xf32>
    %c0_14 = arith.constant 0 : index
    %c0_15 = arith.constant 0 : index
    %11 = vector.load %arg4[%c0_14, %c0_15] : memref<16x128xf32, #tpu.memory_space<vmem>>, vector<16x128xf32>
    %c0_16 = arith.constant 0 : index
    %c0_17 = arith.constant 0 : index
    %12 = vector.load %arg5[%c0_16, %c0_17] : memref<32x128xf32, #tpu.memory_space<vmem>>, vector<32x128xf32>
    %c0_18 = arith.constant 0 : index
    %c0_19 = arith.constant 0 : index
    %13 = vector.load %arg6[%c0_18, %c0_19] : memref<32x32xf32, #tpu.memory_space<vmem>>, vector<32x32xf32>
    %c0_20 = arith.constant 0 : index
    %c0_21 = arith.constant 0 : index
    %14 = vector.load %arg7[%c0_20, %c0_21] : memref<1x128xf32, #tpu.memory_space<vmem>>, vector<1x128xf32>
    %c0_22 = arith.constant 0 : index
    %c0_23 = arith.constant 0 : index
    %15 = vector.load %arg8[%c0_22, %c0_23] : memref<32x8xf32, #tpu.memory_space<vmem>>, vector<32x8xf32>
    %c0_24 = arith.constant 0 : index
    %c0_25 = arith.constant 0 : index
    %16 = vector.load %arg9[%c0_24, %c0_25] : memref<1x8xf32, #tpu.memory_space<vmem>>, vector<1x8xf32>
    %cst = arith.constant dense<0.000000e+00> : vector<8x128xf32>
    %17 = tpu.matmul %8, %11, %cst {dimension_numbers = #tpu.dot_dimension_numbers<[1], [0], [0], [1], [0, 0, 1, 1], [], []>} : vector<8x16xf32>, vector<16x128xf32>, vector<8x128xf32> -> vector<8x128xf32>
    %cst_26 = arith.constant dense<0.000000e+00> : vector<8x128xf32>
    %18 = tpu.matmul %9, %12, %cst_26 {dimension_numbers = #tpu.dot_dimension_numbers<[1], [0], [0], [1], [0, 0, 1, 1], [], []>} : vector<8x32xf32>, vector<32x128xf32>, vector<8x128xf32> -> vector<8x128xf32>
    %19 = arith.addf %17, %18 : vector<8x128xf32>
    %20 = vector.broadcast %14 : vector<1x128xf32> to vector<8x128xf32>
    %21 = arith.addf %19, %20 : vector<8x128xf32>
    %22 = vector.extract_strided_slice %21 {offsets = [0, 64], sizes = [8, 32], strides = [1, 1]} : vector<8x128xf32> to vector<8x32xf32>
    %cst_27 = arith.constant dense<0.000000e+00> : vector<8x32xf32>
    %23 = tpu.matmul %10, %13, %cst_27 {dimension_numbers = #tpu.dot_dimension_numbers<[1], [0], [0], [1], [0, 0, 1, 1], [], []>} : vector<8x32xf32>, vector<32x32xf32>, vector<8x32xf32> -> vector<8x32xf32>
    %24 = arith.addf %22, %23 : vector<8x32xf32>
    %25 = vector.extract_strided_slice %21 {offsets = [0, 0], sizes = [8, 32], strides = [1, 1]} : vector<8x128xf32> to vector<8x32xf32>
    %26 = arith.negf %25 : vector<8x32xf32>
    %27 = math.exp %26 : vector<8x32xf32>
    %cst_28 = arith.constant 1.000000e+00 : f32
    %28 = vector.broadcast %cst_28 : f32 to vector<8x32xf32>
    %29 = arith.addf %28, %27 : vector<8x32xf32>
    %30 = arith.divf %28, %29 : vector<8x32xf32>
    %31 = vector.extract_strided_slice %21 {offsets = [0, 32], sizes = [8, 32], strides = [1, 1]} : vector<8x128xf32> to vector<8x32xf32>
    %32 = arith.negf %31 : vector<8x32xf32>
    %33 = math.exp %32 : vector<8x32xf32>
    %cst_29 = arith.constant 1.000000e+00 : f32
    %34 = vector.broadcast %cst_29 : f32 to vector<8x32xf32>
    %35 = arith.addf %34, %33 : vector<8x32xf32>
    %36 = arith.divf %34, %35 : vector<8x32xf32>
    %37 = arith.negf %24 : vector<8x32xf32>
    %38 = math.exp %37 : vector<8x32xf32>
    %cst_30 = arith.constant 1.000000e+00 : f32
    %39 = vector.broadcast %cst_30 : f32 to vector<8x32xf32>
    %40 = arith.addf %39, %38 : vector<8x32xf32>
    %41 = arith.divf %39, %40 : vector<8x32xf32>
    %cst_31 = arith.constant 5.000000e-01 : f32
    %42 = vector.broadcast %cst_31 : f32 to vector<8x32xf32>
    %43 = arith.mulf %42, %41 : vector<8x32xf32>
    %44 = vector.extract_strided_slice %21 {offsets = [0, 96], sizes = [8, 32], strides = [1, 1]} : vector<8x128xf32> to vector<8x32xf32>
    %45 = math.tanh %44 : vector<8x32xf32>
    %cst_32 = arith.constant 1.000000e+00 : f32
    %46 = vector.broadcast %cst_32 : f32 to vector<8x32xf32>
    %cst_33 = arith.constant 0.000000e+00 : f32
    %47 = vector.broadcast %cst_33 : f32 to vector<8x32xf32>
    %cst_34 = arith.constant 0.000000e+00 : f32
    %48 = vector.broadcast %cst_34 : f32 to vector<8x32xf32>
    %49 = arith.subf %48, %43 : vector<8x32xf32>
    %cst_35 = arith.constant 1.000000e+00 : f32
    %50 = vector.broadcast %cst_35 : f32 to vector<8x32xf32>
    %51 = arith.mulf %49, %50 : vector<8x32xf32>
    %52 = arith.mulf %46, %51 : vector<8x32xf32>
    %53 = arith.mulf %52, %7 : vector<8x32xf32>
    %54 = arith.addf %47, %53 : vector<8x32xf32>
    %cst_36 = arith.constant 1.000000e+00 : f32
    %55 = vector.broadcast %cst_36 : f32 to vector<8x32xf32>
    %56 = arith.subf %55, %43 : vector<8x32xf32>
    %cst_37 = arith.constant 5.000000e-01 : f32
    %57 = vector.broadcast %cst_37 : f32 to vector<8x32xf32>
    %58 = arith.mulf %56, %57 : vector<8x32xf32>
    %59 = arith.mulf %52, %58 : vector<8x32xf32>
    %60 = arith.mulf %59, %5 : vector<8x32xf32>
    %61 = arith.addf %54, %60 : vector<8x32xf32>
    %cst_38 = arith.constant 2.000000e+00 : f32
    %62 = vector.broadcast %cst_38 : f32 to vector<8x32xf32>
    %63 = arith.subf %62, %43 : vector<8x32xf32>
    %cst_39 = arith.constant 0.333333343 : f32
    %64 = vector.broadcast %cst_39 : f32 to vector<8x32xf32>
    %65 = arith.mulf %63, %64 : vector<8x32xf32>
    %66 = arith.mulf %59, %65 : vector<8x32xf32>
    %67 = arith.mulf %66, %3 : vector<8x32xf32>
    %68 = arith.addf %61, %67 : vector<8x32xf32>
    %cst_40 = arith.constant 3.000000e+00 : f32
    %69 = vector.broadcast %cst_40 : f32 to vector<8x32xf32>
    %70 = arith.subf %69, %43 : vector<8x32xf32>
    %cst_41 = arith.constant 2.500000e-01 : f32
    %71 = vector.broadcast %cst_41 : f32 to vector<8x32xf32>
    %72 = arith.mulf %70, %71 : vector<8x32xf32>
    %73 = arith.mulf %66, %72 : vector<8x32xf32>
    %74 = arith.mulf %73, %1 : vector<8x32xf32>
    %75 = arith.addf %68, %74 : vector<8x32xf32>
    %cst_42 = arith.constant 0.000000e+00 : f32
    %76 = vector.broadcast %cst_42 : f32 to vector<8x32xf32>
    %77 = arith.subf %76, %75 : vector<8x32xf32>
    %78 = arith.mulf %45, %30 : vector<8x32xf32>
    %79 = arith.addf %77, %78 : vector<8x32xf32>
    %80 = math.tanh %79 : vector<8x32xf32>
    %81 = arith.mulf %36, %80 : vector<8x32xf32>
    %cst_43 = arith.constant dense<0.000000e+00> : vector<8x8xf32>
    %82 = tpu.matmul %81, %15, %cst_43 {dimension_numbers = #tpu.dot_dimension_numbers<[1], [0], [0], [1], [0, 0, 1, 1], [], []>} : vector<8x32xf32>, vector<32x8xf32>, vector<8x8xf32> -> vector<8x8xf32>
    %83 = vector.broadcast %16 : vector<1x8xf32> to vector<8x8xf32>
    %84 = arith.addf %82, %83 : vector<8x8xf32>
    %85 = tpu.concatenate %84, %81, %43 in 1 : vector<8x8xf32>, vector<8x32xf32>, vector<8x32xf32> -> vector<8x72xf32>
    %c0_44 = arith.constant 0 : index
    %c0_45 = arith.constant 0 : index
    %86 = vector.load %arg10[%c0_44, %c0_45] : memref<8x72xf32, #tpu.memory_space<vmem>>, vector<8x72xf32>
    tpu.vector_store %arg10[%c0_44, %c0_45], %85 {strides = array<i32>} : memref<8x72xf32, #tpu.memory_space<vmem>>, vector<8x72xf32>,
    %c0_46 = arith.constant 0 : index
    %c0_47 = arith.constant 0 : index
    %c0_48 = arith.constant 0 : index
    %87 = vector.load %arg11[%c0_46, %c0_47, %c0_48] : memref<4x8x32xf32, #tpu.memory_space<vmem>>, vector<1x8x32xf32>
    %88 = vector.shape_cast %87 : vector<1x8x32xf32> to vector<8x32xf32>
    %89 = vector.shape_cast %3 : vector<8x32xf32> to vector<1x8x32xf32>
    tpu.vector_store %arg11[%c0_46, %c0_47, %c0_48], %89 {strides = array<i32>} : memref<4x8x32xf32, #tpu.memory_space<vmem>>, vector<1x8x32xf32>,
    %c1_49 = arith.constant 1 : index
    %c0_50 = arith.constant 0 : index
    %c0_51 = arith.constant 0 : index
    %90 = vector.load %arg11[%c1_49, %c0_50, %c0_51] : memref<4x8x32xf32, #tpu.memory_space<vmem>>, vector<1x8x32xf32>
    %91 = vector.shape_cast %90 : vector<1x8x32xf32> to vector<8x32xf32>
    %92 = vector.shape_cast %5 : vector<8x32xf32> to vector<1x8x32xf32>
    tpu.vector_store %arg11[%c1_49, %c0_50, %c0_51], %92 {strides = array<i32>} : memref<4x8x32xf32, #tpu.memory_space<vmem>>, vector<1x8x32xf32>,
    %c2_52 = arith.constant 2 : index
    %c0_53 = arith.constant 0 : index
    %c0_54 = arith.constant 0 : index
    %93 = vector.load %arg11[%c2_52, %c0_53, %c0_54] : memref<4x8x32xf32, #tpu.memory_space<vmem>>, vector<1x8x32xf32>
    %94 = vector.shape_cast %93 : vector<1x8x32xf32> to vector<8x32xf32>
    %95 = vector.shape_cast %7 : vector<8x32xf32> to vector<1x8x32xf32>
    tpu.vector_store %arg11[%c2_52, %c0_53, %c0_54], %95 {strides = array<i32>} : memref<4x8x32xf32, #tpu.memory_space<vmem>>, vector<1x8x32xf32>,
    %c3_55 = arith.constant 3 : index
    %c0_56 = arith.constant 0 : index
    %c0_57 = arith.constant 0 : index
    %96 = vector.load %arg11[%c3_55, %c0_56, %c0_57] : memref<4x8x32xf32, #tpu.memory_space<vmem>>, vector<1x8x32xf32>
    %97 = vector.shape_cast %96 : vector<1x8x32xf32> to vector<8x32xf32>
    %98 = vector.shape_cast %79 : vector<8x32xf32> to vector<1x8x32xf32>
    tpu.vector_store %arg11[%c3_55, %c0_56, %c0_57], %98 {strides = array<i32>} : memref<4x8x32xf32, #tpu.memory_space<vmem>>, vector<1x8x32xf32>,
    return
  }
}

</mosaic_0001>

<bundles_post_ra>
// kernel: tpu_custom_call.1
= control target key start
LH: loop header
LB: loop body
LE: loop exit
PB: predicated region body
PF: predicated region fallthrough
CT: control target
= control target key end

     0   :  { %17 = vsyncpa [#allocation3], 0  ;;  %s771_s0 = inlined_call_operand.vmem [shape: f32[8,16], index: 0, kind: input, shape index: {}]   ;;  %s772_s1 = inlined_call_operand.hbm [shape: f32[8,32], index: 1, kind: input, shape index: {}]   ;;  %s773_s2 = inlined_call_operand.vmem [shape: f32[4,8,32], index: 2, kind: input, shape index: {}]   ;;  %s774_s3 = inlined_call_operand.hbm [shape: f32[8,32], index: 3, kind: input, shape index: {}]   ;;  %s775_s4 = inlined_call_operand.hbm [shape: f32[16,128], index: 4, kind: input, shape index: {}]   ;;  %s776_s5 = inlined_call_operand.hbm [shape: f32[32,128], index: 5, kind: input, shape index: {}]   ;;  %s777_s6 = inlined_call_operand.hbm [shape: f32[32,32], index: 6, kind: input, shape index: {}]   ;;  %s778_s7 = inlined_call_operand.vmem [shape: f32[1,128], index: 7, kind: input, shape index: {}]   ;;  %s779_s8 = inlined_call_operand.vmem [shape: f32[32,8], index: 8, kind: input, shape index: {}]   ;;  %s780_s9 = inlined_call_operand.vmem [shape: f32[1,8], index: 9, kind: input, shape index: {}]   ;;  %s781_s10 = inlined_call_operand.hbm [shape: f32[8,72], index: 10, kind: output, shape index: {0}]   ;;  %s782_s11 = inlined_call_operand.hbm [shape: f32[4,8,32], index: 11, kind: output, shape index: {1}]  }
   0x1   :  { %18 = vsyncpa [#allocation6], 0 }
   0x2   :  { %19 = vsyncpa [#allocation9], 0 }
   0x3   :  { %20 = vsyncpa [#allocation4], 0  ;;  %s42_s19 = sshll.u32 %s774_s3, 4  ;;  %s43_s19 = int_to_ptr.hbm [resolvable:$true] %s42_s19 }
   0x4   :  { %21 = vsyncpa [#allocation13], 0  ;;  %s612_s20 = smov [#allocation5]   ;;  %s65_s24 = sshll.u32 %s776_s5, 4  ;;  %s66_s24 = int_to_ptr.hbm [resolvable:$true] %s65_s24 }
   0x5   :  { %s44_s21 = sshll.u32 %s612_s20, 4  ;;  %s613_s25 = smov [#allocation8]   ;;  %s45_s21 = int_to_ptr.vmem [resolvable:$true] %s44_s21 }
   0x6   :  { %47 = dma.hbm_to_vmem [thread:$0]  %s43_s19, 128, %s45_s21, [#allocation6]  }
   0x7   :  { %s67_s26 = sshll.u32 %s613_s25, 4  ;;  %s29_s29 = sshll.u32 %s772_s1, 4  ;;  %s68_s26 = int_to_ptr.vmem [resolvable:$true] %s67_s26  ;;  %s30_s29 = int_to_ptr.hbm [resolvable:$true] %s29_s29 }
   0x8   :  { %s614_s3 = smov 128   ;;  %s615_s30 = smov 8  }
   0x9   :  { %73 = dma.hbm_to_vmem [thread:$0]  %s66_s24, 512, %s68_s26, [#allocation9], %s614_s3, %s614_s3, %s615_s30  }
   0xa   :  { %s52_s14 = sshll.u32 %s775_s4, 4  ;;  %s616_s5 = smov [#allocation2]   ;;  %s53_s14 = int_to_ptr.hbm [resolvable:$true] %s52_s14 }
   0xb   :  { %s31_s15 = sshll.u32 %s616_s5, 4  ;;  %s617_s16 = smov [#allocation7]   ;;  %s32_s15 = int_to_ptr.vmem [resolvable:$true] %s31_s15 }
   0xc   :  { %34 = dma.hbm_to_vmem [thread:$0]  %s30_s29, 128, %s32_s15, [#allocation3]  }
   0xd   :  { %s54_s17 = sshll.u32 %s617_s16, 4  ;;  %s78_s19 = sshll.u32 %s777_s6, 4  ;;  %s55_s17 = int_to_ptr.vmem [resolvable:$true] %s54_s17  ;;  %s79_s19 = int_to_ptr.hbm [resolvable:$true] %s78_s19 }
   0xe   :  { %60 = dma.hbm_to_vmem [thread:$0]  %s53_s14, 256, %s55_s17, [#allocation6], %s614_s3, %s614_s3, %s615_s30  }
   0xf   :  { %s618_s20 = smov [#allocation10]  }
  0x10   :  { %s80_s21 = sshll.u32 %s618_s20, 4  ;;  %s81_s21 = int_to_ptr.vmem [resolvable:$true] %s80_s21 }
  0x11   :  { %86 = dma.hbm_to_vmem [thread:$0]  %s79_s19, 512, %s81_s21, [#allocation9], %s614_s3, %s614_s3, %s615_s30  }
  0x12   :  { %602 = dma.done.wait [#allocation3], 128  }
  0x13   :  { %603 = vsyncadd [#allocation3], 4294967168 }
  0x14   :  { %604 = dma.done.wait [#allocation6], 384  }
  0x15   :  { %605 = vsyncadd [#allocation6], 4294966912 }
  0x16   :  { %606 = dma.done.wait [#allocation9], 1024  }
  0x17   :  { %607 = vsyncadd [#allocation9], 4294966272  ;;  %v128_v0 = vld [vmem:[#allocation8 + $0x18] sm:$0xff]  ;;  %v127_v2 = vld [vmem:[#allocation8 + $0x10] sm:$0xff]  ;;  %vm163_vm0 = vcmask 130048   ;;  %vm139_vm1 = vcmask 261120  }
  0x18   :  { %v132_v1 = vld [vmem:[#allocation10 + $0x18] sm:$0xff]  ;;  %155 = vmatpush.msra.mxu0 %v128_v0  ;;  %v131_v3 = vld [vmem:[#allocation10 + $0x10] sm:$0xff]  ;;  %v126_v5 = vld [vmem:[#allocation8 + $0x8] sm:$0xff]  ;;  %s619_s27 = smov 64   ;;  %s621_s13 = smov 104   ;;  %vm345_vm10 = vcmask 64512  }
  0x19   :  { %206 = vmatpush.msra.mxu2 %v132_v1  ;;  %v124_v4 = vld [vmem:[#allocation7 + $0x8] sm:$0xff]  ;;  %v130_v6 = vld [vmem:[#allocation10 + $0x8] sm:$0xff]  ;;  %v123_v7 = vld [vmem:[#allocation7] sm:$0xff]  ;;  %s622_s20 = smov [#allocation12]   ;;  %s379_s6 = sshll.u32 %s782_s11, 4  ;;  %vm347_vm11 = vcmask 326656   ;;  %s380_s6 = int_to_ptr.hbm [resolvable:$true] %s379_s6 }
  0x1a   :  { %181 = vmatpush.msra.mxu1 %v124_v4  ;;  %156 = vmatpush.msra.mxu0 %v127_v2  ;;  %v125_v8 = vld [vmem:[#allocation8] sm:$0xff]  ;;  %v122_v12 = vld [vmem:[#allocation5] sm:$0xff]  ;;  %v401_v17 = vld [vmem:[%s773_s2 + $0x18] sm:$0xff]  ;;  %s377_s21 = sshll.u32 %s622_s20, 4  ;;  %vm349_vm12 = vcmask 588800   ;;  %s378_s21 = int_to_ptr.vmem [resolvable:$true] %s377_s21 }
  0x1b   :  { %207 = vmatpush.msra.mxu2 %v131_v3  ;;  %v120_v9 = vld [vmem:[%s771_s0] sm:$0xff]  ;;  %v399_v18 = vld [vmem:[%s773_s2 + $0x8] sm:$0xff]  ;;  %261 = vrot.lane.b32.xlu1 %v401_v17, %s619_s27  ;;  %355 = vst.msk [vmem:[#allocation12 + $0x10] sm:$0xff] %vm139_vm1, %v401_v17  ;;  %v400_v19 = vld [vmem:[%s773_s2 + $0x10] sm:$0xff]  ;;  %s623_s0 = smov [#allocation11]  }
  0x1c   :  { %182 = vmatpush.msra.mxu1 %v123_v7  ;;  %v129_v10 = vld [vmem:[#allocation10] sm:$0xff]  ;;  %157 = vmatpush.msra.mxu0 %v126_v5  ;;  %353 = vst.msk [vmem:[#allocation12 + $0x8] sm:$0xff] %vm139_vm1, %v400_v19  ;;  %v136_v17 = vld [vmem:[%s779_s8 + $0x10] sm:$0xff]  ;;  %s367_s24 = sshll.u32 %s623_s0, 4  ;;  %s368_s24 = int_to_ptr.vmem [resolvable:$true] %s367_s24 }
  0x1d   :  { %208 = vmatpush.msra.mxu2 %v130_v6  ;;  %v121_v11 = vld [vmem:[#allocation2] sm:$0xff]  ;;  %403 = vmatmul.msk.f32.vlgmr.msra.gmra.mxu1 %vm163_vm0, %v120_v9  ;;  %351 = vst.msk [vmem:[#allocation12] sm:$0xff] %vm139_vm1, %v399_v18 }
  0x1e   :  { %158 = vmatpush.msra.mxu0 %v125_v8  ;;  %v420_v14 = vld [vmem:[%s778_s7] ss:$0 sm:$0xff]  ;;  %279 = vrot.lane.b32.xlu2 %v399_v18, %s619_s27  ;;  %v135_v18 = vld [vmem:[%s779_s8 + $0x8] sm:$0xff] }
  0x1f   :  { %209 = vmatpush.msra.mxu2 %v129_v10  ;;  %402 = vmatmul.msk.f32.vlgmr.msra.gmra.mxu0 %vm139_vm1, %v121_v11  ;;  %v113_v23 = vld [vmem:[%s773_s2] sm:$0xff]  ;;  %s620_s2 = smov 96  }
  0x20   :  { %404 = vmatmul.msk.f32.vlgmr.msra.gmra.mxu2 %vm139_vm1, %v122_v12 }
  0x23   :  { %270 = vrot.lane.b32.xlu1 %v400_v19, %s619_s27  ;;  %v134_v19 = vld [vmem:[%s779_s8] sm:$0xff] }
  0x26   :  { %288 = vrot.lane.b32.xlu2 %v113_v23, %s619_s27 }
  0x78   :  { %v280_v60 = vpop.permute.xlu2 %279 }
  0x80   :  { %v289_v8 = vpop.permute.xlu2 %288 }
  0x8d   :  { %v262_v55 = vpop.permute.xlu1 %261 }
  0x95   :  { %v271_v62 = vpop.permute.xlu1 %270 }
  0x9a   :  { %v184_v13 = vpop.f32.mrf.mxu1 }
  0x9c   :  { %v160_v15 = vpop.f32.mrf.mxu0 }
  0x9d   :  { %v185_v16 = vadd.f32 %v184_v13, %v160_v15 }
  0x9f   :  { %v190_v20 = vadd.f32 %v420_v14, %v185_v16  ;;  %v137_v16 = vld [vmem:[%s779_s8 + $0x18] sm:$0xff] }
  0xa0   :  { %330 = vmatpush.msra.mxu3 %v137_v16 }
  0xa1   :  { %v405_v21 = vmul.f32 -1.442695, %v190_v20 }
  0xa2   :  { %331 = vmatpush.msra.mxu3 %v136_v17 }
  0xa3   :  { %v211_v22 = vpop.f32.mrf.mxu2  ;;  %422 = vpow2.f32 %v405_v21 }
  0xa4   :  { %215 = vrot.lane.b32.xlu0 %v211_v22, %s619_s27  ;;  %332 = vmatpush.msra.mxu3 %v135_v18 }
  0xa6   :  { %333 = vmatpush.msra.mxu3 %v134_v19 }
  0xa9   :  { %v423_v24 = vpop.eup %422 }
  0xaa   :  { %v222_v25 = vadd.f32 1.0, %v423_v24  ;;  %v421_v24 = vld [vmem:[%s780_s9] ss:$0 sm:$0xff] }
  0xac   :  { %424 = vrcp.f32 %v222_v25  ;;  %v234_v29 = vand.u32 2147483648, %v222_v25  ;;  %v232_v31 = vand.u32 2147483647, %v222_v25  ;;  %vm228_vm3 = vweird.f32 %v222_v25 }
  0xad   :  { %426 = vtanh.f32 %v190_v20 }
  0xae   :  { %v235_v33 = vor.u32 1.1754944e-38, %v234_v29  ;;  %vm233_vm5 = vcmp.eq.f32.partialorder %v232_v31, 8.507059e+37 }
  0xb2   :  { %v425_v26 = vpop.eup %424 }
  0xb3   :  { %v224_v27 = vmul.f32 %v425_v26, %v222_v25  ;;  %vm229_vm2 = vweird.f32 %v425_v26  ;;  %v427_v37 = vpop.eup %426 }
  0xb4   :  { %vm230_vm4 = vmor %vm228_vm3, %vm229_vm2 }
  0xb5   :  { %v225_v28 = vsub.f32 1.0, %v224_v27 }
  0xb7   :  { %v226_v30 = vmul.f32 %v425_v26, %v225_v28 }
  0xb9   :  { %v227_v32 = vadd.f32 %v425_v26, %v226_v30 }
  0xbb   :  { %v231_v34 = vsel %vm230_vm4, %v425_v26, %v227_v32 }
  0xbc   :  { %v736_v35 = vsel %vm233_vm5, %v235_v33, %v231_v34 }
  0xbd   :  { %295 = vrot.lane.b32.xlu0 %v736_v35, %s620_s2 }
 0x116   :  { %v216_v36 = vpop.permute.xlu0 %215 }
 0x117   :  { %v218_v40 = vadd.f32 %v216_v36, %v190_v20 }
 0x119   :  { %v406_v41 = vmul.f32 -1.442695, %v218_v40 }
 0x11b   :  { %428 = vpow2.f32 %v406_v41 }
 0x121   :  { %v429_v42 = vpop.eup %428 }
 0x122   :  { %v241_v43 = vadd.f32 1.0, %v429_v42 }
 0x124   :  { %430 = vrcp.f32 %v241_v43  ;;  %v253_v49 = vand.u32 2147483648, %v241_v43  ;;  %vm247_vm7 = vweird.f32 %v241_v43  ;;  %v251_v50 = vand.u32 2147483647, %v241_v43 }
 0x126   :  { %v254_v52 = vor.u32 1.1754944e-38, %v253_v49  ;;  %vm252_vm9 = vcmp.eq.f32.partialorder %v251_v50, 8.507059e+37 }
 0x12a   :  { %v431_v44 = vpop.eup %430 }
 0x12b   :  { %v243_v45 = vmul.f32 %v431_v44, %v241_v43  ;;  %vm248_vm6 = vweird.f32 %v431_v44 }
 0x12c   :  { %vm249_vm8 = vmor %vm247_vm7, %vm248_vm6 }
 0x12d   :  { %v244_v46 = vsub.f32 1.0, %v243_v45 }
 0x12f   :  { %v296_v38 = vpop.permute.xlu0 %295  ;;  %v245_v47 = vmul.f32 %v431_v44, %v244_v46 }
 0x130   :  { %v298_v39 = vmul.f32 %v427_v37, %v296_v38 }
 0x131   :  { %v246_v48 = vadd.f32 %v431_v44, %v245_v47 }
 0x132   :  { %300 = vrot.lane.b32.xlu0 %v298_v39, %s620_s2 }
 0x133   :  { %v250_v51 = vsel %vm249_vm8, %v431_v44, %v246_v48 }
 0x134   :  { %v255_v53 = vsel %vm252_vm9, %v254_v52, %v250_v51 }
 0x135   :  { %v257_v54 = vmul.f32 0.5, %v255_v53 }
 0x137   :  { %v266_v56 = vsub.f32 1.0, %v257_v54  ;;  %v259_v58 = vsub.f32 0.0, %v257_v54  ;;  %v275_v59 = vsub.f32 2.0, %v257_v54  ;;  %v284_v0 = vsub.f32 3.0, %v257_v54 }
 0x139   :  { %v267_v57 = vmul.f32 0.5, %v266_v56  ;;  %v276_v63 = vmul.f32 0.33333334, %v275_v59  ;;  %v264_v3 = vmul.f32 %v262_v55, %v259_v58  ;;  %v285_v4 = vmul.f32 0.25, %v284_v0 }
 0x13b   :  { %v268_v61 = vmul.f32 %v267_v57, %v259_v58 }
 0x13d   :  { %v277_v1 = vmul.f32 %v276_v63, %v268_v61  ;;  %v273_v2 = vmul.f32 %v271_v62, %v268_v61 }
 0x13f   :  { %v282_v5 = vmul.f32 %v280_v60, %v277_v1  ;;  %v274_v6 = vadd.f32 %v273_v2, %v264_v3  ;;  %v286_v7 = vmul.f32 %v285_v4, %v277_v1 }
 0x141   :  { %v283_v9 = vadd.f32 %v282_v5, %v274_v6  ;;  %v291_v10 = vmul.f32 %v289_v8, %v286_v7 }
 0x143   :  { %v292_v11 = vadd.f32 %v291_v10, %v283_v9 }
 0x145   :  { %v293_v12 = vsub.f32 0.0, %v292_v11 }
 0x1a4   :  { %v301_v13 = vpop.permute.xlu0 %300 }
 0x1a5   :  { %v303_v14 = vadd.f32 %v301_v13, %v293_v12 }
 0x1a7   :  { %432 = vtanh.f32 %v303_v14 }
 0x1ad   :  { %v433_v15 = vpop.eup %432 }
 0x1ae   :  { %306 = vrot.lane.b32.xlu1 %v433_v15, %s620_s2 }
 0x1b6   :  { %342 = vrot.lane.b32.xlu1 %v257_v54, %s621_s13 }
 0x220   :  { %v307_v20 = vpop.permute.xlu1 %306 }
 0x221   :  { %v309_v21 = vmul.f32 %v307_v20, %v736_v35 }
 0x223   :  { %338 = vrot.lane.b32.xlu0 %v309_v21, %s621_s13  ;;  %314 = vrot.lane.b32.xlu2 %v309_v21, %s620_s2 }
 0x228   :  { %v343_v28 = vpop.permute.xlu1 %342 }
 0x22b   :  { %357 = vrot.lane.b32.xlu2 %v303_v14, %s619_s27  ;;  %s369_s27 = sshll.u32 %s781_s10, 4  ;;  %s370_s27 = int_to_ptr.hbm [resolvable:$true] %s369_s27 }
 0x27d   :  { %v315_v22 = vpop.permute.xlu2 %314 }
 0x27e   :  { %407 = vmatmul.msk.f32.vlgmr.msra.gmra.mxu3 %vm139_vm1, %v315_v22 }
 0x285   :  { %v358_v23 = vpop.permute.xlu2 %357 }
 0x286   :  { %361 = vst.msk [vmem:[#allocation12 + $0x18] sm:$0xff] %vm139_vm1, %v358_v23 }
 0x287   :  { %385 = dma.vmem_to_hbm [thread:$0]  %s378_s21, 512, %s380_s6, [#allocation13], %s614_s3, %s614_s3, %s615_s30  }
 0x295   :  { %v339_v27 = vpop.permute.xlu0 %338 }
 0x301   :  { %v335_v25 = vpop.f32.mrf.mxu3 }
 0x302   :  { %v336_v26 = vadd.f32 %v421_v24, %v335_v25 }
 0x304   :  { %v346_v29 = vsel %vm345_vm10, %v336_v26, %v339_v27 }
 0x305   :  { %v348_v30 = vsel %vm347_vm11, %v346_v29, %v343_v28 }
 0x306   :  { %350 = vst.msk [vmem:[#allocation11] sm:$0xff] %vm349_vm12, %v348_v30 }
 0x307   :  { %372 = dma.vmem_to_hbm [thread:$0]  %s368_s24, 128, %s370_s27, [#allocation4]  }
 0x308   :  { %608 = dma.done.wait [#allocation4], 128  }
 0x309   :  { %609 = vsyncadd [#allocation4], 4294967168 }
 0x30a   :  { %610 = dma.done.wait [#allocation13], 512  }
 0x30b   :  { %611 = vsyncadd [#allocation13], 4294966784 }
 0x30c   :  { %394 = vsyncpa [#allocation3], 1 }
 0x30d   :  { %395 = vsyncpa [#allocation6], 1 }
 0x30e   :  { %396 = vsyncpa [#allocation9], 1 }
 0x30f   :  { %397 = vsyncpa [#allocation4], 1 }
 0x310   :  { %398 = vsyncpa [#allocation13], 1 }

</bundles_post_ra>
